<compile_context>
chip_gen: v6e
topology: v6e:2x2x1
jax: 0.10.0
libtpu: 0.0.40
codegen_flags: <defaults>
</compile_context>

<pallas_src>
import jax
import jax.numpy as jnp
from jax.experimental import pallas as pl
from jax.experimental.pallas import tpu as pltpu

EPS = 1e-5
NUM_CLASSES = 3

IN_PAD = 32    # concat input width 29 -> padded to 32 lanes (full-array block)
H1 = 384       # fused layer-1 width 304 -> padded to 384
H2 = 256       # fused layer-2 width 160 -> padded to 256
COMB = 128     # classifier hidden widths (64/32/16/3) padded to 128
CDIM = 80      # real combined width (32+16+8+8+8+8)


# ----------------------------------------------------------------------------
# Kernel: 6 matmuls (block-diag pathways x2, folded attn/resid/cls1, cls2-4)
# ----------------------------------------------------------------------------
def triage_kernel(x_ref, w1_ref, w2_ref, w3_ref, wc_ref, b_ref, o_ref):
    def mm(a, w):
        return jnp.dot(a, w, preferred_element_type=jnp.float32)

    def relu_bf16(v):
        return jnp.maximum(v, 0.0).astype(jnp.bfloat16)

    x = x_ref[...]                                                # (TB, 32) bf16

    # fused pathway layers 1 & 2 (BN folded into W1/W2 blocks)
    h1 = relu_bf16(mm(x, w1_ref[...]) + b_ref[0:1, :])            # (TB, 384)
    h2 = relu_bf16(mm(h1, w2_ref[...]) + b_ref[1:2, :H2])         # (TB, 256)

    # folded chain: pathway layer 3 -> attention(seq=1) + residual -> cls layer 1
    h = relu_bf16(mm(h2, w3_ref[...]) + b_ref[2:3, :COMB])        # (TB, 128)

    # classifier layers 2..4 (BN folded where present)
    h = relu_bf16(mm(h, wc_ref[0]) + b_ref[3:4, :COMB])
    h = relu_bf16(mm(h, wc_ref[1]) + b_ref[4:5, :COMB])
    o_ref[...] = (mm(h, wc_ref[2]) + b_ref[5:6, :COMB]).astype(o_ref.dtype)


# ----------------------------------------------------------------------------
# Raw parameter construction (mirrors the PyTorch module structure)
# ----------------------------------------------------------------------------
def init_raw_params(key):
    keys = iter(jax.random.split(key, 64))

    def lin(fi, fo):
        limit = (6.0 / (fi + fo)) ** 0.5
        w = jax.random.uniform(next(keys), (fi, fo), jnp.float32, -limit, limit)
        return {"w": w, "b": jnp.zeros((fo,), jnp.float32)}

    def bn(n):
        return {"gamma": jnp.ones((n,), jnp.float32),
                "beta": jnp.zeros((n,), jnp.float32),
                "mean": jnp.zeros((n,), jnp.float32),
                "var": jnp.ones((n,), jnp.float32)}

    p = {}
    p["vital"]   = [lin(8, 128), bn(128), lin(128, 64), bn(64), lin(64, 32)]
    p["symptom"] = [lin(5, 64),  bn(64),  lin(64, 32),  bn(32), lin(32, 16)]
    p["risk"]    = [lin(2, 32),  lin(32, 16), lin(16, 8)]
    p["context"] = [lin(4, 32),  lin(32, 16), lin(16, 8)]
    p["lab"]     = [lin(8, 32),  lin(32, 16), lin(16, 8)]
    p["inter"]   = [lin(2, 16),  lin(16, 8)]
    # attention (seq_len==1): only V and out projections matter.
    # TODO(synk): when loading real PyTorch weights, v_proj = in_proj[2E:3E].
    p["v_proj"]   = lin(CDIM, CDIM)
    p["out_proj"] = lin(CDIM, CDIM)
    p["residual"] = lin(CDIM, CDIM)
    p["cls"] = [lin(CDIM, 64), bn(64), lin(64, 32), bn(32), lin(32, 16),
                lin(16, NUM_CLASSES)]
    return p


# ----------------------------------------------------------------------------
# Pack: fold BN, build block-diagonal fused weights, fold the linear chain,
# pad to lane-dense widths, cast weights to bf16 (biases stay f32).
# ----------------------------------------------------------------------------
def _fold_bn(w, b, bnp):
    scale = bnp["gamma"] / jnp.sqrt(bnp["var"] + EPS)
    return w * scale[None, :], (b - bnp["mean"]) * scale + bnp["beta"]


def _pathway_layers(raw, name):
    p = raw[name]
    if name in ("vital", "symptom"):
        return (_fold_bn(p[0]["w"], p[0]["b"], p[1]),
                _fold_bn(p[2]["w"], p[2]["b"], p[3]),
                (p[4]["w"], p[4]["b"]))
    if name == "inter":
        # 2-layer pathway: identity pass-through as fused layer 2
        # (ReLU(ReLU(x)) == ReLU(x), exact).
        ident = (jnp.eye(16, dtype=jnp.float32), jnp.zeros((16,), jnp.float32))
        return ((p[0]["w"], p[0]["b"]), ident, (p[1]["w"], p[1]["b"]))
    return ((p[0]["w"], p[0]["b"]), (p[1]["w"], p[1]["b"]), (p[2]["w"], p[2]["b"]))


def pack_params(raw):
    names = ["vital", "symptom", "risk", "context", "lab", "inter"]

    W1 = jnp.zeros((IN_PAD, H1), jnp.float32)
    b1 = jnp.zeros((H1,), jnp.float32)
    W2 = jnp.zeros((H1, H2), jnp.float32)
    b2 = jnp.zeros((H2,), jnp.float32)
    W3 = jnp.zeros((H2, CDIM), jnp.float32)
    b3 = jnp.zeros((CDIM,), jnp.float32)

    r0 = c1 = c2 = c3 = 0
    for n in names:
        (w1, bb1), (w2, bb2), (w3, bb3) = _pathway_layers(raw, n)
        din, d1 = w1.shape
        d2 = w2.shape[1]
        d3 = w3.shape[1]
        W1 = W1.at[r0:r0 + din, c1:c1 + d1].set(w1)
        b1 = b1.at[c1:c1 + d1].set(bb1)
        W2 = W2.at[c1:c1 + d1, c2:c2 + d2].set(w2)
        b2 = b2.at[c2:c2 + d2].set(bb2)
        W3 = W3.at[c2:c2 + d2, c3:c3 + d3].set(w3)
        b3 = b3.at[c3:c3 + d3].set(bb3)
        r0 += din; c1 += d1; c2 += d2; c3 += d3

    # Fold: combined -> (len-1 attention + residual) -> classifier layer 1.
    wv, bv = raw["v_proj"]["w"], raw["v_proj"]["b"]
    wo, bo = raw["out_proj"]["w"], raw["out_proj"]["b"]
    wr, br = raw["residual"]["w"], raw["residual"]["b"]
    M = wv @ wo + wr                              # (80, 80)
    bM = bv @ wo + bo + br                        # (80,)

    c = raw["cls"]
    wc1, bc1 = _fold_bn(c[0]["w"], c[0]["b"], c[1])        # (80, 64)
    Wbig = W3 @ M @ wc1                                     # (256, 64)
    bbig = (b3 @ M + bM) @ wc1 + bc1                        # (64,)

    wc2, bc2 = _fold_bn(c[2]["w"], c[2]["b"], c[3])        # (64, 32)
    wc3, bc3 = c[4]["w"], c[4]["b"]                         # (32, 16)
    wc4, bc4 = c[5]["w"], c[5]["b"]                         # (16, 3)

    def pad_w(w):
        return jnp.zeros((COMB, COMB), jnp.float32).at[:w.shape[0], :w.shape[1]].set(w)

    def pad_b(b):
        return jnp.zeros((COMB,), jnp.float32).at[:b.shape[0]].set(b)

    W3big = jnp.zeros((H2, COMB), jnp.float32).at[:, :Wbig.shape[1]].set(Wbig)
    wcls = jnp.stack([pad_w(wc2), pad_w(wc3), pad_w(wc4)], axis=0)   # (3,128,128)

    bias = jnp.zeros((8, H1), jnp.float32)
    bias = bias.at[0, :H1].set(b1)
    bias = bias.at[1, :H2].set(b2)
    bias = bias.at[2, :COMB].set(pad_b(bbig))
    bias = bias.at[3, :COMB].set(pad_b(bc2))
    bias = bias.at[4, :COMB].set(pad_b(bc3))
    bias = bias.at[5, :COMB].set(pad_b(bc4))

    return (W1.astype(jnp.bfloat16),
            W2.astype(jnp.bfloat16),
            W3big.astype(jnp.bfloat16),
            wcls.astype(jnp.bfloat16),
            bias)


# ----------------------------------------------------------------------------
# Wrapper
# ----------------------------------------------------------------------------
@jax.jit
def forward(vital, symptom, risk, context, lab, inter, packed):
    W1, W2, W3, Wcls, bias = packed
    B = vital.shape[0]

    # single concatenate + small zero-pad to a lane-dense (Bp, 32) bf16 stream
    x = jnp.concatenate([vital, symptom, risk, context, lab, inter], axis=1)
    din = x.shape[1]                                    # 29

    Bp = ((B + 15) // 16) * 16                          # bf16 sublane packing
    if Bp >= 128:
        # >= 2 grid steps so the parallel axis shards across v7x's two TCs
        half = (Bp + 1) // 2
        TB = min(512, ((half + 15) // 16) * 16)
        Bp = ((Bp + TB - 1) // TB) * TB
    else:
        TB = Bp
    x = jnp.pad(x, ((0, Bp - B), (0, IN_PAD - din))).astype(jnp.bfloat16)

    grid_spec = pltpu.PrefetchScalarGridSpec(
        num_scalar_prefetch=0,
        grid=(Bp // TB,),
        in_specs=[
            pl.BlockSpec((TB, IN_PAD), lambda i: (i, 0)),          # activations
            pl.BlockSpec((IN_PAD, H1), lambda i: (0, 0)),          # W1 (resident)
            pl.BlockSpec((H1, H2), lambda i: (0, 0)),              # W2
            pl.BlockSpec((H2, COMB), lambda i: (0, 0)),            # folded W3 chain
            pl.BlockSpec((3, COMB, COMB), lambda i: (0, 0, 0)),    # cls 2..4 weights
            pl.BlockSpec((8, H1), lambda i: (0, 0)),               # bias slab (f32)
        ],
        out_specs=pl.BlockSpec((TB, COMB), lambda i: (i, 0)),
    )

    out = pl.pallas_call(
        triage_kernel,
        out_shape=jax.ShapeDtypeStruct((Bp, COMB), jnp.bfloat16),
        grid_spec=grid_spec,
        compiler_params=pltpu.CompilerParams(
            dimension_semantics=("parallel",)),
    )(x, W1, W2, W3, Wcls, bias)

    return out[:B, :NUM_CLASSES].astype(jnp.float32)


# ----------------------------------------------------------------------------
# Demo
# ----------------------------------------------------------------------------
if __name__ == "__main__":
    B = 8
    key = jax.random.PRNGKey(0)
    k_in, k_param = jax.random.split(key)
    ks = jax.random.split(k_in, 6)

    vital_data = jax.random.normal(ks[0], (B, 8), jnp.float32)
    symptom_data = jax.random.normal(ks[1], (B, 5), jnp.float32)
    risk_data = jax.random.normal(ks[2], (B, 2), jnp.float32)
    context_data = jax.random.normal(ks[3], (B, 4), jnp.float32)
    lab_data = jax.random.normal(ks[4], (B, 8), jnp.float32)
    interaction_data = jax.random.normal(ks[5], (B, 2), jnp.float32)

    raw = init_raw_params(k_param)
    packed = pack_params(raw)

    out = forward(vital_data, symptom_data, risk_data, context_data,
                  lab_data, interaction_data, packed)
    jax.block_until_ready(out)
    assert out.shape == (B, NUM_CLASSES)
    print("KERNEL_OK")
</pallas_src>

<mosaic_0001>
module attributes {stable_mosaic.version = 11 : i64} {
  func.func @triage_kernel(%arg0: i32, %arg1: memref<16x32xbf16, #tpu.memory_space<vmem>>, %arg2: memref<32x384xbf16, #tpu.memory_space<vmem>>, %arg3: memref<384x256xbf16, #tpu.memory_space<vmem>>, %arg4: memref<256x128xbf16, #tpu.memory_space<vmem>>, %arg5: memref<3x128x128xbf16, #tpu.memory_space<vmem>>, %arg6: memref<8x384xf32, #tpu.memory_space<vmem>>, %arg7: memref<16x128xbf16, #tpu.memory_space<vmem>>) attributes {dimension_semantics = [#tpu.dimension_semantics<parallel>], iteration_bounds = array<i64: 1>, scalar_prefetch = 0 : i64, scratch_operands = 0 : i64, tpu.core_type = #tpu.core_type<tc>, window_params = [{transform_indices = @transform_0, window_bounds = array<i64: 16, 32>}, {pipeline_mode = #tpu.pipeline_mode<synchronous>, transform_indices = @transform_1, window_bounds = array<i64: 32, 384>}, {pipeline_mode = #tpu.pipeline_mode<synchronous>, transform_indices = @transform_2, window_bounds = array<i64: 384, 256>}, {pipeline_mode = #tpu.pipeline_mode<synchronous>, transform_indices = @transform_3, window_bounds = array<i64: 256, 128>}, {pipeline_mode = #tpu.pipeline_mode<synchronous>, transform_indices = @transform_4, window_bounds = array<i64: 3, 128, 128>}, {pipeline_mode = #tpu.pipeline_mode<synchronous>, transform_indices = @transform_5, window_bounds = array<i64: 8, 384>}, {transform_indices = @transform_6, window_bounds = array<i64: 16, 128>}]} {
    %c0 = arith.constant 0 : index
    %c0_0 = arith.constant 0 : index
    %0 = vector.load %arg1[%c0, %c0_0] : memref<16x32xbf16, #tpu.memory_space<vmem>>, vector<16x32xbf16>
    %c0_1 = arith.constant 0 : index
    %c0_2 = arith.constant 0 : index
    %1 = vector.load %arg2[%c0_1, %c0_2] : memref<32x384xbf16, #tpu.memory_space<vmem>>, vector<32x384xbf16>
    %cst = arith.constant dense<0.000000e+00> : vector<16x384xf32>
    %2 = tpu.matmul %0, %1, %cst {dimension_numbers = #tpu.dot_dimension_numbers<[1], [0], [0], [1], [0, 0, 1, 1], [], []>} : vector<16x32xbf16>, vector<32x384xbf16>, vector<16x384xf32> -> vector<16x384xf32>
    %c0_3 = arith.constant 0 : index
    %c0_4 = arith.constant 0 : index
    %3 = vector.load %arg6[%c0_3, %c0_4] : memref<8x384xf32, #tpu.memory_space<vmem>>, vector<1x384xf32>
    %4 = vector.broadcast %3 : vector<1x384xf32> to vector<16x384xf32>
    %5 = arith.addf %2, %4 : vector<16x384xf32>
    %cst_5 = arith.constant 0.000000e+00 : f32
    %6 = vector.broadcast %cst_5 : f32 to vector<16x384xf32>
    %7 = arith.maximumf %5, %6 : vector<16x384xf32>
    %8 = arith.truncf %7 : vector<16x384xf32> to vector<16x384xbf16>
    %c0_6 = arith.constant 0 : index
    %c0_7 = arith.constant 0 : index
    %9 = vector.load %arg3[%c0_6, %c0_7] : memref<384x256xbf16, #tpu.memory_space<vmem>>, vector<384x256xbf16>
    %cst_8 = arith.constant dense<0.000000e+00> : vector<16x256xf32>
    %10 = tpu.matmul %8, %9, %cst_8 {dimension_numbers = #tpu.dot_dimension_numbers<[1], [0], [0], [1], [0, 0, 1, 1], [], []>} : vector<16x384xbf16>, vector<384x256xbf16>, vector<16x256xf32> -> vector<16x256xf32>
    %c1 = arith.constant 1 : index
    %c0_9 = arith.constant 0 : index
    %11 = vector.load %arg6[%c1, %c0_9] : memref<8x384xf32, #tpu.memory_space<vmem>>, vector<1x256xf32>
    %12 = vector.broadcast %11 : vector<1x256xf32> to vector<16x256xf32>
    %13 = arith.addf %10, %12 : vector<16x256xf32>
    %cst_10 = arith.constant 0.000000e+00 : f32
    %14 = vector.broadcast %cst_10 : f32 to vector<16x256xf32>
    %15 = arith.maximumf %13, %14 : vector<16x256xf32>
    %16 = arith.truncf %15 : vector<16x256xf32> to vector<16x256xbf16>
    %c0_11 = arith.constant 0 : index
    %c0_12 = arith.constant 0 : index
    %17 = vector.load %arg4[%c0_11, %c0_12] : memref<256x128xbf16, #tpu.memory_space<vmem>>, vector<256x128xbf16>
    %cst_13 = arith.constant dense<0.000000e+00> : vector<16x128xf32>
    %18 = tpu.matmul %16, %17, %cst_13 {dimension_numbers = #tpu.dot_dimension_numbers<[1], [0], [0], [1], [0, 0, 1, 1], [], []>} : vector<16x256xbf16>, vector<256x128xbf16>, vector<16x128xf32> -> vector<16x128xf32>
    %c2 = arith.constant 2 : index
    %c0_14 = arith.constant 0 : index
    %19 = vector.load %arg6[%c2, %c0_14] : memref<8x384xf32, #tpu.memory_space<vmem>>, vector<1x128xf32>
    %20 = vector.broadcast %19 : vector<1x128xf32> to vector<16x128xf32>
    %21 = arith.addf %18, %20 : vector<16x128xf32>
    %cst_15 = arith.constant 0.000000e+00 : f32
    %22 = vector.broadcast %cst_15 : f32 to vector<16x128xf32>
    %23 = arith.maximumf %21, %22 : vector<16x128xf32>
    %24 = arith.truncf %23 : vector<16x128xf32> to vector<16x128xbf16>
    %c0_16 = arith.constant 0 : index
    %c0_17 = arith.constant 0 : index
    %c0_18 = arith.constant 0 : index
    %25 = vector.load %arg5[%c0_16, %c0_17, %c0_18] : memref<3x128x128xbf16, #tpu.memory_space<vmem>>, vector<1x128x128xbf16>
    %26 = vector.shape_cast %25 : vector<1x128x128xbf16> to vector<128x128xbf16>
    %cst_19 = arith.constant dense<0.000000e+00> : vector<16x128xf32>
    %27 = tpu.matmul %24, %26, %cst_19 {dimension_numbers = #tpu.dot_dimension_numbers<[1], [0], [0], [1], [0, 0, 1, 1], [], []>} : vector<16x128xbf16>, vector<128x128xbf16>, vector<16x128xf32> -> vector<16x128xf32>
    %c3 = arith.constant 3 : index
    %c0_20 = arith.constant 0 : index
    %28 = vector.load %arg6[%c3, %c0_20] : memref<8x384xf32, #tpu.memory_space<vmem>>, vector<1x128xf32>
    %29 = vector.broadcast %28 : vector<1x128xf32> to vector<16x128xf32>
    %30 = arith.addf %27, %29 : vector<16x128xf32>
    %cst_21 = arith.constant 0.000000e+00 : f32
    %31 = vector.broadcast %cst_21 : f32 to vector<16x128xf32>
    %32 = arith.maximumf %30, %31 : vector<16x128xf32>
    %33 = arith.truncf %32 : vector<16x128xf32> to vector<16x128xbf16>
    %c1_22 = arith.constant 1 : index
    %c0_23 = arith.constant 0 : index
    %c0_24 = arith.constant 0 : index
    %34 = vector.load %arg5[%c1_22, %c0_23, %c0_24] : memref<3x128x128xbf16, #tpu.memory_space<vmem>>, vector<1x128x128xbf16>
    %35 = vector.shape_cast %34 : vector<1x128x128xbf16> to vector<128x128xbf16>
    %cst_25 = arith.constant dense<0.000000e+00> : vector<16x128xf32>
    %36 = tpu.matmul %33, %35, %cst_25 {dimension_numbers = #tpu.dot_dimension_numbers<[1], [0], [0], [1], [0, 0, 1, 1], [], []>} : vector<16x128xbf16>, vector<128x128xbf16>, vector<16x128xf32> -> vector<16x128xf32>
    %c4 = arith.constant 4 : index
    %c0_26 = arith.constant 0 : index
    %37 = vector.load %arg6[%c4, %c0_26] : memref<8x384xf32, #tpu.memory_space<vmem>>, vector<1x128xf32>
    %38 = vector.broadcast %37 : vector<1x128xf32> to vector<16x128xf32>
    %39 = arith.addf %36, %38 : vector<16x128xf32>
    %cst_27 = arith.constant 0.000000e+00 : f32
    %40 = vector.broadcast %cst_27 : f32 to vector<16x128xf32>
    %41 = arith.maximumf %39, %40 : vector<16x128xf32>
    %42 = arith.truncf %41 : vector<16x128xf32> to vector<16x128xbf16>
    %c2_28 = arith.constant 2 : index
    %c0_29 = arith.constant 0 : index
    %c0_30 = arith.constant 0 : index
    %43 = vector.load %arg5[%c2_28, %c0_29, %c0_30] : memref<3x128x128xbf16, #tpu.memory_space<vmem>>, vector<1x128x128xbf16>
    %44 = vector.shape_cast %43 : vector<1x128x128xbf16> to vector<128x128xbf16>
    %cst_31 = arith.constant dense<0.000000e+00> : vector<16x128xf32>
    %45 = tpu.matmul %42, %44, %cst_31 {dimension_numbers = #tpu.dot_dimension_numbers<[1], [0], [0], [1], [0, 0, 1, 1], [], []>} : vector<16x128xbf16>, vector<128x128xbf16>, vector<16x128xf32> -> vector<16x128xf32>
    %c5 = arith.constant 5 : index
    %c0_32 = arith.constant 0 : index
    %46 = vector.load %arg6[%c5, %c0_32] : memref<8x384xf32, #tpu.memory_space<vmem>>, vector<1x128xf32>
    %47 = vector.broadcast %46 : vector<1x128xf32> to vector<16x128xf32>
    %48 = arith.addf %45, %47 : vector<16x128xf32>
    %49 = arith.truncf %48 : vector<16x128xf32> to vector<16x128xbf16>
    %c0_33 = arith.constant 0 : index
    %c0_34 = arith.constant 0 : index
    %50 = vector.load %arg7[%c0_33, %c0_34] : memref<16x128xbf16, #tpu.memory_space<vmem>>, vector<16x128xbf16>
    tpu.vector_store %arg7[%c0_33, %c0_34], %49 {strides = array<i32>} : memref<16x128xbf16, #tpu.memory_space<vmem>>, vector<16x128xbf16>,
    return
  }
  func.func @transform_0(%arg0: i32) -> (i32, i32) {
    %c0_i32 = arith.constant 0 : i32
    %c0_i32_0 = arith.constant 0 : i32
    return %arg0, %c0_i32 : i32, i32
  }
  func.func @transform_1(%arg0: i32) -> (i32, i32) {
    %c0_i32 = arith.constant 0 : i32
    %c0_i32_0 = arith.constant 0 : i32
    %c0_i32_1 = arith.constant 0 : i32
    return %c0_i32, %c0_i32_0 : i32, i32
  }
  func.func @transform_2(%arg0: i32) -> (i32, i32) {
    %c0_i32 = arith.constant 0 : i32
    %c0_i32_0 = arith.constant 0 : i32
    %c0_i32_1 = arith.constant 0 : i32
    return %c0_i32, %c0_i32_0 : i32, i32
  }
  func.func @transform_3(%arg0: i32) -> (i32, i32) {
    %c0_i32 = arith.constant 0 : i32
    %c0_i32_0 = arith.constant 0 : i32
    %c0_i32_1 = arith.constant 0 : i32
    return %c0_i32, %c0_i32_0 : i32, i32
  }
  func.func @transform_4(%arg0: i32) -> (i32, i32, i32) {
    %c0_i32 = arith.constant 0 : i32
    %c0_i32_0 = arith.constant 0 : i32
    %c0_i32_1 = arith.constant 0 : i32
    %c0_i32_2 = arith.constant 0 : i32
    return %c0_i32, %c0_i32_0, %c0_i32_1 : i32, i32, i32
  }
  func.func @transform_5(%arg0: i32) -> (i32, i32) {
    %c0_i32 = arith.constant 0 : i32
    %c0_i32_0 = arith.constant 0 : i32
    %c0_i32_1 = arith.constant 0 : i32
    return %c0_i32, %c0_i32_0 : i32, i32
  }
  func.func @transform_6(%arg0: i32) -> (i32, i32) {
    %c0_i32 = arith.constant 0 : i32
    %c0_i32_0 = arith.constant 0 : i32
    return %arg0, %c0_i32 : i32, i32
  }
}

</mosaic_0001>

<bundles_post_ra>
// kernel: forward.1
= control target key start
LH: loop header
LB: loop body
LE: loop exit
PB: predicated region body
PF: predicated region fallthrough
CT: control target
= control target key end

     0   :  { %11 = vsyncpa [#allocation3], 0  ;;  %s1701_s0 = inlined_call_operand.vmem [shape: bf16[16,32], index: 0, kind: input, shape index: {}]   ;;  %s1702_s1 = inlined_call_operand.vmem [shape: bf16[32,384], index: 1, kind: input, shape index: {}]   ;;  %s1703_s2 = inlined_call_operand.hbm [shape: bf16[384,256], index: 2, kind: input, shape index: {}]   ;;  %s1704_s3 = inlined_call_operand.hbm [shape: bf16[256,128], index: 3, kind: input, shape index: {}]   ;;  %s1705_s4 = inlined_call_operand.hbm [shape: bf16[3,128,128], index: 4, kind: input, shape index: {}]   ;;  %s1706_s5 = inlined_call_operand.vmem [shape: f32[8,384], index: 5, kind: input, shape index: {}]   ;;  %s1707_s6 = inlined_call_operand.vmem [shape: bf16[16,128], index: 6, kind: output, shape index: {}]  }
   0x1   :  { %12 = vsyncpa [#allocation5], 0  ;;  %s1556_s21 = smov [#allocation4]  }
   0x2   :  { %s34_s22 = sshll.u32 %s1556_s21, 4  ;;  %s35_s22 = int_to_ptr.vmem [resolvable:$true] %s34_s22 }
   0x3   :  { %s1500_s23 = scalar_lea.vmem %s35_s22, 2048  ;;  %p1505_p1 = scmp.lt.s32.totalorder %s35_s22, %s35_s22 }
   0x4   :  { %p1501_p0 = scmp.ne.s32.totalorder %s35_s22, %s1500_s23  ;;  %p1506_p2 = scmp.lt.s32.totalorder %s1500_s23, %s1500_s23 }
   0x6   :  { %p1507_p3 = por %p1506_p2, %p1505_p1 }
   0x8   :  { %p1508_p4 = pnand %p1507_p3, %p1501_p0 }
   0xa   :  { %1511 = shalt.err (!%p1508_p4)
}
   0xb   :  { %s1557_s24 = smov 64   ;;  %s1558_s25 = smov 4  }
   0xc   :  { %40 = dma.hbm_to_vmem [thread:$0]  %s1704_s3, 2048, %s35_s22, [#allocation5], %s1557_s24, %s1557_s24, %s1558_s25  }
   0xd   :  { %s1559_s28 = smov [#allocation2]  }
   0xe   :  { %s22_s29 = sshll.u32 %s1559_s28, 4  ;;  %s23_s29 = int_to_ptr.vmem [resolvable:$true] %s22_s29 }
   0xf   :  { %s1520_s30 = scalar_lea.vmem %s23_s29, 6144  ;;  %p1525_p6 = scmp.lt.s32.totalorder %s23_s29, %s23_s29 }
  0x10   :  { %p1521_p5 = scmp.ne.s32.totalorder %s23_s29, %s1520_s30  ;;  %p1526_p7 = scmp.lt.s32.totalorder %s1520_s30, %s1520_s30 }
  0x12   :  { %p1527_p8 = por %p1526_p7, %p1525_p6 }
  0x14   :  { %p1528_p9 = pnand %p1527_p8, %p1521_p5 }
  0x16   :  { %1531 = shalt.err (!%p1528_p9)
}
  0x17   :  { %s1560_s7 = smov 128   ;;  %s1561_s8 = smov 8  }
  0x18   :  { %28 = dma.hbm_to_vmem [thread:$0]  %s1703_s2, 6144, %s23_s29, [#allocation3], %s1560_s7, %s1560_s7, %s1561_s8  }
  0x19   :  { %s1562_s11 = smov [#allocation6]  }
  0x1a   :  { %s46_s12 = sshll.u32 %s1562_s11, 4  ;;  %s47_s12 = int_to_ptr.vmem [resolvable:$true] %s46_s12 }
  0x1b   :  { %s1540_s3 = scalar_lea.vmem %s47_s12, 3072  ;;  %p1545_p11 = scmp.lt.s32.totalorder %s47_s12, %s47_s12 }
  0x1c   :  { %p1541_p10 = scmp.ne.s32.totalorder %s47_s12, %s1540_s3  ;;  %p1546_p12 = scmp.lt.s32.totalorder %s1540_s3, %s1540_s3 }
  0x1e   :  { %p1547_p13 = por %p1546_p12, %p1545_p11 }
  0x20   :  { %p1548_p0 = pnand %p1547_p13, %p1541_p10 }
  0x22   :  { %1551 = shalt.err (!%p1548_p0)
}
  0x23   :  { %52 = dma.hbm_to_vmem [thread:$0]  %s1705_s4, 3072, %s47_s12, [#allocation5], %s1557_s24, %s1557_s24, %s1558_s25  }
  0x24   :  { %1552 = dma.done.wait [#allocation3], 6144  }
  0x25   :  { %1553 = vsyncadd [#allocation3], 4294961152 }
  0x26   :  { %1554 = dma.done.wait [#allocation5], 5120  }
  0x27   :  { %1555 = vsyncadd [#allocation5], 4294962176  ;;  %v1563_v0 = vmov 0   ;;  %v1371_v1 = vld [vmem:[%s1702_s1 + $0x1c] ss:$12 sps:$4 sm:$0xff]   ;;  %v1377_v5 = vld [vmem:[%s1701_s0] sm:$0xff]   ;;  %v77_v58 = vlaneseq }
  0x28   :  { %165 = vmatprep.mubr.bf16.mxu1 %v1563_v0  ;;  %v1373_v2 = vld [vmem:[%s1702_s1 + $0x18] ss:$12 sps:$4 sm:$0xff]   ;;  %145 = vmatprep.subr.bf16.mxu1 %v1371_v1  ;;  %v1376_v4 = vld [vmem:[%s1702_s1] ss:$12 sps:$4 sm:$0xff]   ;;  %v1380_v7 = vld [vmem:[#allocation2 + $0x74] ss:$8 sps:$4 sm:$0xff]  }
  0x29   :  { %v1374_v3 = vld [vmem:[%s1702_s1 + $0x4] ss:$12 sps:$4 sm:$0xff]   ;;  %146 = vmatpush1.bf16.msra.mxu1 %v1373_v2  ;;  %v1378_v6 = vld [vmem:[%s1702_s1 + $0x20] ss:$12 sps:$4 sm:$0xff]   ;;  %vm129_vm0 = vcmask 261120   ;;  %v1564_v10 = vmov 0.0   ;;  %527 = vmatprep.subr.bf16.mxu0 %v1380_v7 }
  0x2a   :  { %147 = vmatprep.subr.bf16.mxu1 %v1374_v3  ;;  %v1382_v8 = vld [vmem:[#allocation2 + $0x70] ss:$8 sps:$4 sm:$0xff]   ;;  %v1383_v9 = vld [vmem:[#allocation2 + $0x64] ss:$8 sps:$4 sm:$0xff]   ;;  %v1385_v11 = vld [vmem:[#allocation2 + $0x60] ss:$8 sps:$4 sm:$0xff]  }
  0x2b   :  { %528 = vmatpush1.bf16.msra.mxu0 %v1382_v8  ;;  %v1386_v12 = vld [vmem:[#allocation2 + $0x54] ss:$8 sps:$4 sm:$0xff]   ;;  %vm1565_vm1 = vmmov 0   ;;  %v1388_v14 = vld [vmem:[#allocation2 + $0x50] ss:$8 sps:$4 sm:$0xff]   ;;  %v1638_v59 = vshrl.u32 %v77_v58, 7 }
  0x2c   :  { %529 = vmatprep.subr.bf16.mxu0 %v1383_v9  ;;  %v1379_v13 = vld [vmem:[%s1702_s1 + $0x8] ss:$12 sps:$4 sm:$0xff]   ;;  %v1389_v15 = vld [vmem:[#allocation2 + $0x44] ss:$8 sps:$4 sm:$0xff]   ;;  %v1410_v18 = vld [vmem:[#allocation2 + $0x170] ss:$8 sps:$4 sm:$0xff]  }
  0x2d   :  { %148 = vmatpush1.bf16.msra.mxu1 %v1376_v4  ;;  %v1391_v16 = vld [vmem:[#allocation2 + $0x40] ss:$8 sps:$4 sm:$0xff]   ;;  %v1392_v17 = vld [vmem:[#allocation2 + $0x34] ss:$8 sps:$4 sm:$0xff]   ;;  %v1394_v20 = vld [vmem:[#allocation2 + $0x30] ss:$8 sps:$4 sm:$0xff]  }
  0x2e   :  { %1293 = vmatprep.subr.bf16.mxu1 %v1564_v10  ;;  %v1412_v19 = vld [vmem:[#allocation2 + $0x174] ss:$8 sps:$4 sm:$0xff]   ;;  %v1395_v21 = vld [vmem:[#allocation2 + $0x24] ss:$8 sps:$4 sm:$0xff]   ;;  %v1416_v23 = vld [vmem:[#allocation2 + $0x160] ss:$8 sps:$4 sm:$0xff]  }
  0x2f   :  { %530 = vmatpush1.bf16.msra.mxu0 %v1385_v11  ;;  %v1418_v22 = vld [vmem:[#allocation2 + $0x164] ss:$8 sps:$4 sm:$0xff]   ;;  %v1397_v24 = vld [vmem:[#allocation2 + $0x20] ss:$8 sps:$4 sm:$0xff]   ;;  %v1424_v25 = vld [vmem:[#allocation2 + $0x154] ss:$8 sps:$4 sm:$0xff]  }
  0x30   :  { %1141 = vmatmul.mubr.msk.bf16.vlgmr.msra.gmra.mxu1 %vm129_vm0, %v1377_v5  ;;  %531 = vmatprep.subr.bf16.mxu0 %v1386_v12  ;;  %v1398_v26 = vld [vmem:[#allocation2 + $0x14] ss:$8 sps:$4 sm:$0xff]   ;;  %v1400_v27 = vld [vmem:[#allocation2 + $0x10] ss:$8 sps:$4 sm:$0xff]   ;;  %v1401_v29 = vld [vmem:[#allocation2 + $0x4] ss:$8 sps:$4 sm:$0xff]  }
  0x31   :  { %1294 = vmatpush3.bf16.msra.mxu1 %v1378_v6  ;;  %1297 = vmatprep.mubr.msk.bf16.mxu1 %vm1565_vm1, %v1564_v10  ;;  %v1422_v28 = vld [vmem:[#allocation2 + $0x150] ss:$8 sps:$4 sm:$0xff]   ;;  %v1430_v30 = vld [vmem:[#allocation2 + $0x144] ss:$8 sps:$4 sm:$0xff]   ;;  %v1428_v31 = vld [vmem:[#allocation2 + $0x140] ss:$8 sps:$4 sm:$0xff]  }
  0x32   :  { %1295 = vmatprep.subr.bf16.mxu1 %v1564_v10  ;;  %v1403_v32 = vld [vmem:[#allocation2] ss:$8 sps:$4 sm:$0xff]   ;;  %v1404_v33 = vld [vmem:[#allocation2 + $0xf4] ss:$8 sps:$4 sm:$0xff]   ;;  %v1406_v34 = vld [vmem:[#allocation2 + $0xf0] ss:$8 sps:$4 sm:$0xff]  }
  0x33   :  { %532 = vmatpush1.bf16.msra.mxu0 %v1388_v14  ;;  %v1407_v35 = vld [vmem:[#allocation2 + $0xe4] ss:$8 sps:$4 sm:$0xff]   ;;  %v1409_v36 = vld [vmem:[#allocation2 + $0xe0] ss:$8 sps:$4 sm:$0xff]   ;;  %v1413_v37 = vld [vmem:[#allocation2 + $0xd4] ss:$8 sps:$4 sm:$0xff]  }
  0x34   :  { %533 = vmatprep.subr.bf16.mxu0 %v1389_v15  ;;  %v1415_v38 = vld [vmem:[#allocation2 + $0xd0] ss:$8 sps:$4 sm:$0xff]   ;;  %v1419_v39 = vld [vmem:[#allocation2 + $0xc4] ss:$8 sps:$4 sm:$0xff]   ;;  %v1421_v40 = vld [vmem:[#allocation2 + $0xc0] ss:$8 sps:$4 sm:$0xff]  }
  0x35   :  { %1296 = vmatpush3.bf16.msra.mxu1 %v1379_v13  ;;  %v1425_v41 = vld [vmem:[#allocation2 + $0xb4] ss:$8 sps:$4 sm:$0xff]   ;;  %v1427_v42 = vld [vmem:[#allocation2 + $0xb0] ss:$8 sps:$4 sm:$0xff]   ;;  %v1431_v43 = vld [vmem:[#allocation2 + $0xa4] ss:$8 sps:$4 sm:$0xff]  }
  0x36   :  { %570 = vmatprep.subr.bf16.mxu1 %v1412_v19  ;;  %v1433_v44 = vld [vmem:[#allocation2 + $0xa0] ss:$8 sps:$4 sm:$0xff]   ;;  %v1436_v45 = vld [vmem:[#allocation2 + $0x134] ss:$8 sps:$4 sm:$0xff]   ;;  %v1434_v46 = vld [vmem:[#allocation2 + $0x130] ss:$8 sps:$4 sm:$0xff]  }
  0x37   :  { %534 = vmatpush1.bf16.msra.mxu0 %v1391_v16  ;;  %v1437_v47 = vld [vmem:[#allocation2 + $0x94] ss:$8 sps:$4 sm:$0xff]   ;;  %v1439_v48 = vld [vmem:[#allocation2 + $0x90] ss:$8 sps:$4 sm:$0xff]   ;;  %v1442_v49 = vld [vmem:[#allocation2 + $0x124] ss:$8 sps:$4 sm:$0xff]  }
  0x38   :  { %1298 = vmatmul.mubr.msk.bf16.vlgmr.msra.gmra.mxu1 %vm129_vm0, %v1377_v5  ;;  %535 = vmatprep.subr.bf16.mxu0 %v1392_v17  ;;  %v1440_v50 = vld [vmem:[#allocation2 + $0x120] ss:$8 sps:$4 sm:$0xff]   ;;  %v1443_v51 = vld [vmem:[#allocation2 + $0x84] ss:$8 sps:$4 sm:$0xff]   ;;  %v1448_v53 = vld [vmem:[#allocation2 + $0x114] ss:$8 sps:$4 sm:$0xff]  }
  0x39   :  { %602 = vmatprep.mubr.bf16.mxu1 %v1563_v0  ;;  %571 = vmatpush1.bf16.msra.mxu1 %v1410_v18  ;;  %v1445_v52 = vld [vmem:[#allocation2 + $0x80] ss:$8 sps:$4 sm:$0xff]   ;;  %v1446_v54 = vld [vmem:[#allocation2 + $0x110] ss:$8 sps:$4 sm:$0xff]   ;;  %v1451_v55 = vld [vmem:[#allocation2 + $0x104] ss:$8 sps:$4 sm:$0xff]  }
  0x3a   :  { %572 = vmatprep.subr.bf16.mxu1 %v1418_v22  ;;  %v1449_v56 = vld [vmem:[#allocation2 + $0x100] ss:$8 sps:$4 sm:$0xff]   ;;  %v1452_v57 = vld [vmem:[#allocation4 + $0x78] sm:$0xff]   ;;  %v83_v60 = vsub.s32 1, %v1638_v59  ;;  %v79_v61 = vsub.s32 0, %v1638_v59  ;;  %v87_v3 = vsub.s32 2, %v1638_v59 }
  0x3b   :  { %536 = vmatpush1.bf16.msra.mxu0 %v1394_v20  ;;  %v75_v62 = vld [vmem:[%s1706_s5] ss:$8 sm:$0x7] }
  0x3c   :  { %537 = vmatprep.subr.bf16.mxu0 %v1395_v21  ;;  %v84_v0 = vrot.slane %v75_v62, %v83_v60  ;;  %v80_v1 = vrot.slane %v75_v62, %v79_v61  ;;  %v88_v11 = vrot.slane %v75_v62, %v87_v3 }
  0x3d   :  { %573 = vmatpush1.bf16.msra.mxu1 %v1416_v23 }
  0x3e   :  { %574 = vmatprep.subr.bf16.mxu1 %v1424_v25 }
  0x3f   :  { %538 = vmatpush1.bf16.msra.mxu0 %v1397_v24 }
  0x40   :  { %539 = vmatprep.subr.bf16.mxu0 %v1398_v26  ;;  %v1453_v26 = vld [vmem:[#allocation4 + $0x38] sm:$0xff]  }
  0x41   :  { %575 = vmatpush1.bf16.msra.mxu1 %v1422_v28  ;;  %v1454_v28 = vld [vmem:[#allocation4 + $0x70] sm:$0xff]  }
  0x42   :  { %576 = vmatprep.subr.bf16.mxu1 %v1430_v30  ;;  %v1456_v30 = vld [vmem:[#allocation4 + $0x68] sm:$0xff]  }
  0x43   :  { %540 = vmatpush1.bf16.msra.mxu0 %v1400_v27 }
  0x44   :  { %541 = vmatprep.subr.bf16.mxu0 %v1401_v29  ;;  %v1455_v29 = vld [vmem:[#allocation4 + $0x30] sm:$0xff]  }
  0x45   :  { %577 = vmatpush1.bf16.msra.mxu1 %v1428_v31  ;;  %v1457_v31 = vld [vmem:[#allocation4 + $0x28] sm:$0xff]  }
  0x46   :  { %578 = vmatprep.subr.bf16.mxu1 %v1436_v45  ;;  %v1471_v45 = vld [vmem:[#allocation6 + $0x20] sm:$0xff]  }
  0x47   :  { %542 = vmatpush1.bf16.msra.mxu0 %v1403_v32  ;;  %v1458_v32 = vld [vmem:[#allocation4 + $0x60] sm:$0xff]  }
  0x48   :  { %543 = vmatprep.subr.bf16.mxu0 %v1404_v33  ;;  %v1459_v33 = vld [vmem:[#allocation4 + $0x20] sm:$0xff]  }
  0x49   :  { %579 = vmatpush1.bf16.msra.mxu1 %v1434_v46 }
  0x4a   :  { %580 = vmatprep.subr.bf16.mxu1 %v1442_v49 }
  0x4b   :  { %544 = vmatpush2.bf16.msra.mxu0 %v1406_v34  ;;  %v1460_v34 = vld [vmem:[#allocation4 + $0x58] sm:$0xff]  }
  0x4c   :  { %545 = vmatprep.subr.bf16.mxu0 %v1407_v35  ;;  %v1461_v35 = vld [vmem:[#allocation4 + $0x18] sm:$0xff]  }
  0x4d   :  { %581 = vmatpush1.bf16.msra.mxu1 %v1440_v50 }
  0x4e   :  { %582 = vmatprep.subr.bf16.mxu1 %v1448_v53 }
  0x4f   :  { %546 = vmatpush2.bf16.msra.mxu0 %v1409_v36  ;;  %v1462_v36 = vld [vmem:[#allocation4 + $0x50] sm:$0xff]  }
  0x50   :  { %547 = vmatprep.subr.bf16.mxu0 %v1413_v37  ;;  %v1463_v37 = vld [vmem:[#allocation4 + $0x10] sm:$0xff]  }
  0x51   :  { %583 = vmatpush1.bf16.msra.mxu1 %v1446_v54 }
  0x52   :  { %584 = vmatprep.subr.bf16.mxu1 %v1451_v55 }
  0x53   :  { %548 = vmatpush2.bf16.msra.mxu0 %v1415_v38  ;;  %v1464_v38 = vld [vmem:[#allocation4 + $0x48] sm:$0xff]  }
  0x54   :  { %549 = vmatprep.subr.bf16.mxu0 %v1419_v39  ;;  %v1465_v39 = vld [vmem:[#allocation4 + $0x8] sm:$0xff]  }
  0x55   :  { %585 = vmatpush1.bf16.msra.mxu1 %v1449_v56 }
  0x56   :  { %1244 = vmatprep.subr.bf16.mxu1 %v1452_v57 }
  0x57   :  { %550 = vmatpush2.bf16.msra.mxu0 %v1421_v40  ;;  %v1466_v40 = vld [vmem:[#allocation4 + $0x40] sm:$0xff]  }
  0x58   :  { %551 = vmatprep.subr.bf16.mxu0 %v1425_v41  ;;  %v1467_v41 = vld [vmem:[#allocation4] sm:$0xff]  }
  0x5b   :  { %552 = vmatpush2.bf16.msra.mxu0 %v1427_v42  ;;  %v1468_v42 = vld [vmem:[#allocation6 + $0x38] sm:$0xff]  }
  0x5c   :  { %553 = vmatprep.subr.bf16.mxu0 %v1431_v43  ;;  %v1469_v43 = vld [vmem:[#allocation6 + $0x30] sm:$0xff]  }
  0x5f   :  { %554 = vmatpush2.bf16.msra.mxu0 %v1433_v44  ;;  %v1470_v44 = vld [vmem:[#allocation6 + $0x28] sm:$0xff]  }
  0x60   :  { %555 = vmatprep.subr.bf16.mxu0 %v1437_v47  ;;  %v1143_v47 = vld [vmem:[%s1706_s5 + $0x1] ss:$8 sm:$0x3] }
  0x61   :  { %v284_v49 = vrot.slane %v1143_v47, %v83_v60 }
  0x63   :  { %556 = vmatpush2.bf16.msra.mxu0 %v1439_v48 }
  0x64   :  { %557 = vmatprep.subr.bf16.mxu0 %v1443_v51  ;;  %v280_v51 = vrot.slane %v1143_v47, %v79_v61  ;;  %v1472_v61 = vld [vmem:[#allocation6 + $0x18] sm:$0xff]   ;;  %v1489_v47 = vld [vmem:[#allocation6 + $0x90] sm:$0xff]  }
  0x67   :  { %558 = vmatpush2.bf16.msra.mxu0 %v1445_v52 }
  0x68   :  { %1301 = vmatprep.subr.bf16.mxu0 %v1564_v10 }
  0xf0   :  { %v167_v63 = vpop.f32.mrf.mxu1 }
  0xf1   :  { %v168_v7 = vadd.f32 %v167_v63, %v80_v1 }
  0xf2   :  { %v169_v2 = vpop.f32.mrf.mxu1 }
  0xf3   :  { %v170_v5 = vadd.f32 %v169_v2, %v84_v0  ;;  %v217_v16 = vmax.f32 %v168_v7, 0.0 }
  0xf4   :  { %v171_v4 = vpop.f32.mrf.mxu1 }
  0xf5   :  { %v172_v6 = vadd.f32 %v171_v4, %v80_v1  ;;  %v218_v14 = vmax.f32 %v170_v5, 0.0 }
  0xf6   :  { %v173_v8 = vpop.f32.mrf.mxu1 }
  0xf7   :  { %v174_v9 = vadd.f32 %v173_v8, %v84_v0  ;;  %v220_v12 = vmax.f32 %v172_v6, 0.0  ;;  %v1473_v8 = vld [vmem:[#allocation6 + $0x10] sm:$0xff]  }
  0xf8   :  { %v210_v13 = vpop.f32.mrf.mxu1 }
  0xf9   :  { %v221_v15 = vmax.f32 %v174_v9, 0.0  ;;  %v211_v18 = vadd.f32 %v210_v13, %v88_v11  ;;  %v223_v20 = vpack.c.bf16 %v220_v12, %v217_v16  ;;  %v1474_v9 = vld [vmem:[#allocation6 + $0x8] sm:$0xff]   ;;  %v1476_v12 = vld [vmem:[#allocation6 + $0x78] sm:$0xff]   ;;  %v1477_v13 = vld [vmem:[#allocation6 + $0x70] sm:$0xff]  }
  0xfa   :  { %v1299_v17 = vpop.f32.mrf.mxu1  ;;  %v1480_v16 = vld [vmem:[#allocation6 + $0x58] sm:$0xff]  }
  0xfb   :  { %v224_v19 = vpack.c.bf16 %v221_v15, %v218_v14  ;;  %v219_v24 = vmax.f32 %v211_v18, 0.0  ;;  %v1478_v14 = vld [vmem:[#allocation6 + $0x68] sm:$0xff]   ;;  %v1479_v15 = vld [vmem:[#allocation6 + $0x60] sm:$0xff]  }
  0xfc   :  { %v213_v21 = vpop.f32.mrf.mxu1 }
  0xfd   :  { %v214_v22 = vadd.f32 %v213_v21, %v88_v11  ;;  %559 = vmatprep.mubr.bf16.mxu0 %v224_v19  ;;  %v1475_v11 = vld [vmem:[#allocation6] sm:$0xff]  }
  0xfe   :  { %v1300_v23 = vpop.f32.mrf.mxu1  ;;  %560 = vmatmul.mubr.bf16.vlgmr.msra.gmra.mxu0 %v223_v20  ;;  %v651_v20 = vld [vmem:[%s1706_s5 + $0x2] ss:$0 sm:$0xff] }
  0xff   :  { %v222_v25 = vmax.f32 %v214_v22, 0.0  ;;  %1317 = vmatprep.mubr.msk.bf16.mxu0 %vm1565_vm1, %v1564_v10  ;;  %1302 = vmatpush3.bf16.msra.mxu0 %v1468_v42 }
 0x100   :  { %1303 = vmatprep.subr.bf16.mxu0 %v1564_v10 }
 0x101   :  { %v225_v27 = vpack.c.bf16 %v222_v25, %v219_v24 }
 0x103   :  { %603 = vmatmul.mubr.bf16.vlgmr.msra.gmra.mxu1 %v225_v27  ;;  %1304 = vmatpush3.bf16.msra.mxu0 %v1469_v43 }
 0x104   :  { %1245 = vmatpush3.bf16.msra.mxu1 %v1453_v26  ;;  %1305 = vmatprep.subr.bf16.mxu0 %v1564_v10 }
 0x105   :  { %1246 = vmatprep.subr.bf16.mxu1 %v1454_v28 }
 0x107   :  { %1306 = vmatpush3.bf16.msra.mxu0 %v1470_v44 }
 0x108   :  { %1247 = vmatpush3.bf16.msra.mxu1 %v1455_v29  ;;  %1307 = vmatprep.subr.bf16.mxu0 %v1564_v10  ;;  %v1481_v29 = vld [vmem:[#allocation6 + $0x50] sm:$0xff]  }
 0x109   :  { %1248 = vmatprep.subr.bf16.mxu1 %v1456_v30  ;;  %v1482_v30 = vld [vmem:[#allocation6 + $0x48] sm:$0xff]  }
 0x10b   :  { %1308 = vmatpush3.bf16.msra.mxu0 %v1471_v45 }
 0x10c   :  { %1249 = vmatpush3.bf16.msra.mxu1 %v1457_v31  ;;  %1309 = vmatprep.subr.bf16.mxu0 %v1564_v10  ;;  %v1483_v31 = vld [vmem:[#allocation6 + $0x40] sm:$0xff]  }
 0x10d   :  { %1250 = vmatprep.subr.bf16.mxu1 %v1458_v32  ;;  %v1484_v32 = vld [vmem:[#allocation6 + $0xb8] sm:$0xff]  }
 0x10f   :  { %1310 = vmatpush3.bf16.msra.mxu0 %v1472_v61 }
 0x110   :  { %1251 = vmatpush3.bf16.msra.mxu1 %v1459_v33  ;;  %1311 = vmatprep.subr.bf16.mxu0 %v1564_v10  ;;  %v1485_v33 = vld [vmem:[#allocation6 + $0xb0] sm:$0xff]  }
 0x111   :  { %1252 = vmatprep.subr.bf16.mxu1 %v1460_v34  ;;  %v1486_v34 = vld [vmem:[#allocation6 + $0xa8] sm:$0xff]  }
 0x113   :  { %1312 = vmatpush3.bf16.msra.mxu0 %v1473_v8 }
 0x114   :  { %1253 = vmatpush3.bf16.msra.mxu1 %v1461_v35  ;;  %1313 = vmatprep.subr.bf16.mxu0 %v1564_v10  ;;  %v1487_v35 = vld [vmem:[#allocation6 + $0xa0] sm:$0xff]  }
 0x115   :  { %1254 = vmatprep.subr.bf16.mxu1 %v1462_v36  ;;  %v1488_v36 = vld [vmem:[#allocation6 + $0x98] sm:$0xff]  }
 0x117   :  { %1314 = vmatpush3.bf16.msra.mxu0 %v1474_v9 }
 0x118   :  { %1255 = vmatpush3.bf16.msra.mxu1 %v1463_v37  ;;  %1315 = vmatprep.subr.bf16.mxu0 %v1564_v10  ;;  %v808_v37 = vld [vmem:[%s1706_s5 + $0x3] ss:$0 sm:$0xff] }
 0x119   :  { %1256 = vmatprep.subr.bf16.mxu1 %v1464_v38 }
 0x11b   :  { %1316 = vmatpush3.bf16.msra.mxu0 %v1475_v11 }
 0x11c   :  { %1257 = vmatpush3.bf16.msra.mxu1 %v1465_v39  ;;  %1341 = vmatprep.subr.bf16.mxu0 %v1564_v10 }
 0x11d   :  { %1258 = vmatprep.subr.bf16.mxu1 %v1466_v40 }
 0x120   :  { %1259 = vmatpush3.bf16.msra.mxu1 %v1467_v41 }
 0x121   :  { %1321 = vmatprep.subr.bf16.mxu1 %v1564_v10 }
 0x1be   :  { %v561_v46 = vpop.f32.mrf.mxu0 }
 0x1bf   :  { %v562_v57 = vadd.f32 %v561_v46, %v280_v51 }
 0x1c0   :  { %v563_v48 = vpop.f32.mrf.mxu0 }
 0x1c1   :  { %v564_v55 = vadd.f32 %v563_v48, %v284_v49  ;;  %v1490_v48 = vld [vmem:[#allocation6 + $0x88] sm:$0xff]  }
 0x1c2   :  { %v565_v50 = vpop.f32.mrf.mxu0 }
 0x1c3   :  { %v604_v52 = vpop.f32.mrf.mxu1  ;;  %v566_v56 = vadd.f32 %v565_v50, %v280_v51  ;;  %v918_v50 = vld [vmem:[%s1706_s5 + $0x4] ss:$0 sm:$0xff] }
 0x1c4   :  { %v567_v53 = vpop.f32.mrf.mxu0  ;;  %v605_v1 = vadd.f32 %v604_v52, %v562_v57 }
 0x1c5   :  { %v606_v54 = vpop.f32.mrf.mxu1  ;;  %v568_v62 = vadd.f32 %v567_v53, %v284_v49  ;;  %v1491_v49 = vld [vmem:[#allocation6 + $0x80] sm:$0xff]  }
 0x1c6   :  { %v607_v63 = vadd.f32 %v606_v54, %v564_v55  ;;  %v613_v6 = vmax.f32 %v605_v1, 0.0 }
 0x1c7   :  { %v608_v58 = vpop.f32.mrf.mxu1 }
 0x1c8   :  { %v609_v0 = vadd.f32 %v608_v58, %v566_v56  ;;  %v614_v5 = vmax.f32 %v607_v63, 0.0 }
 0x1c9   :  { %v610_v2 = vpop.f32.mrf.mxu1 }
 0x1ca   :  { %v611_v3 = vadd.f32 %v610_v2, %v568_v62  ;;  %v615_v4 = vmax.f32 %v609_v0, 0.0 }
 0x1cc   :  { %v616_v60 = vmax.f32 %v611_v3, 0.0  ;;  %v617_v59 = vpack.c.bf16 %v615_v4, %v613_v6 }
 0x1ce   :  { %v618_v7 = vpack.c.bf16 %v616_v60, %v614_v5 }
 0x1d0   :  { %780 = vmatprep.mubr.bf16.mxu1 %v618_v7 }
 0x1d1   :  { %781 = vmatmul.mubr.bf16.vlgmr.msra.gmra.mxu1 %v617_v59 }
 0x1d2   :  { %1337 = vmatprep.mubr.msk.bf16.mxu1 %vm1565_vm1, %v1564_v10  ;;  %1322 = vmatpush3.bf16.msra.mxu1 %v1476_v12 }
 0x1d3   :  { %1323 = vmatprep.subr.bf16.mxu1 %v1564_v10 }
 0x1d6   :  { %1324 = vmatpush3.bf16.msra.mxu1 %v1477_v13 }
 0x1d7   :  { %1325 = vmatprep.subr.bf16.mxu1 %v1564_v10 }
 0x1da   :  { %1326 = vmatpush3.bf16.msra.mxu1 %v1478_v14 }
 0x1db   :  { %1327 = vmatprep.subr.bf16.mxu1 %v1564_v10 }
 0x1de   :  { %1328 = vmatpush3.bf16.msra.mxu1 %v1479_v15 }
 0x1df   :  { %1329 = vmatprep.subr.bf16.mxu1 %v1564_v10 }
 0x1e2   :  { %1330 = vmatpush3.bf16.msra.mxu1 %v1480_v16 }
 0x1e3   :  { %1331 = vmatprep.subr.bf16.mxu1 %v1564_v10 }
 0x1e6   :  { %1332 = vmatpush3.bf16.msra.mxu1 %v1481_v29 }
 0x1e7   :  { %1333 = vmatprep.subr.bf16.mxu1 %v1564_v10 }
 0x1ea   :  { %1334 = vmatpush3.bf16.msra.mxu1 %v1482_v30 }
 0x1eb   :  { %1335 = vmatprep.subr.bf16.mxu1 %v1564_v10 }
 0x1ee   :  { %1336 = vmatpush3.bf16.msra.mxu1 %v1483_v31 }
 0x291   :  { %v1260_v17 = vpop.f32.mrf.mxu1 }
 0x293   :  { %v1261_v18 = vpop.f32.mrf.mxu1 }
 0x294   :  { %v1262_v19 = vadd.f32 %v1261_v18, %v1260_v17 }
 0x295   :  { %v1263_v21 = vpop.f32.mrf.mxu1 }
 0x296   :  { %v783_v23 = vadd.f32 %v1262_v19, %v651_v20 }
 0x297   :  { %v1264_v22 = vpop.f32.mrf.mxu1 }
 0x298   :  { %v1265_v24 = vadd.f32 %v1264_v22, %v1263_v21  ;;  %v789_v26 = vmax.f32 %v783_v23, 0.0 }
 0x29a   :  { %v786_v25 = vadd.f32 %v1265_v24, %v651_v20 }
 0x29c   :  { %v790_v27 = vmax.f32 %v786_v25, 0.0 }
 0x29e   :  { %v791_v28 = vpack.c.bf16 %v790_v27, %v789_v26 }
 0x2a0   :  { %1318 = vmatmul.mubr.bf16.vlgmr.msra.gmra.mxu0 %v791_v28 }
 0x2a1   :  { %1357 = vmatprep.mubr.msk.bf16.mxu0 %vm1565_vm1, %v1564_v10  ;;  %1342 = vmatpush3.bf16.msra.mxu0 %v1484_v32 }
 0x2a2   :  { %1343 = vmatprep.subr.bf16.mxu0 %v1564_v10 }
 0x2a5   :  { %1344 = vmatpush3.bf16.msra.mxu0 %v1485_v33 }
 0x2a6   :  { %1345 = vmatprep.subr.bf16.mxu0 %v1564_v10 }
 0x2a9   :  { %1346 = vmatpush3.bf16.msra.mxu0 %v1486_v34 }
 0x2aa   :  { %1347 = vmatprep.subr.bf16.mxu0 %v1564_v10 }
 0x2ad   :  { %1348 = vmatpush3.bf16.msra.mxu0 %v1487_v35 }
 0x2ae   :  { %1349 = vmatprep.subr.bf16.mxu0 %v1564_v10 }
 0x2b1   :  { %1350 = vmatpush3.bf16.msra.mxu0 %v1488_v36 }
 0x2b2   :  { %1351 = vmatprep.subr.bf16.mxu0 %v1564_v10 }
 0x2b5   :  { %1352 = vmatpush3.bf16.msra.mxu0 %v1489_v47 }
 0x2b6   :  { %1353 = vmatprep.subr.bf16.mxu0 %v1564_v10 }
 0x2b9   :  { %1354 = vmatpush3.bf16.msra.mxu0 %v1490_v48 }
 0x2ba   :  { %1355 = vmatprep.subr.bf16.mxu0 %v1564_v10  ;;  %v1028_v10 = vld [vmem:[%s1706_s5 + $0x5] ss:$0 sm:$0xff] }
 0x2bd   :  { %1356 = vmatpush3.bf16.msra.mxu0 %v1491_v49 }
 0x360   :  { %v891_v38 = vpop.f32.mrf.mxu0 }
 0x361   :  { %v892_v40 = vadd.f32 %v891_v38, %v808_v37 }
 0x362   :  { %v1319_v39 = vpop.f32.mrf.mxu0 }
 0x363   :  { %v898_v44 = vmax.f32 %v892_v40, 0.0 }
 0x364   :  { %v894_v41 = vpop.f32.mrf.mxu0 }
 0x365   :  { %v895_v42 = vadd.f32 %v894_v41, %v808_v37 }
 0x366   :  { %v1320_v43 = vpop.f32.mrf.mxu0 }
 0x367   :  { %v899_v45 = vmax.f32 %v895_v42, 0.0 }
 0x369   :  { %v900_v46 = vpack.c.bf16 %v899_v45, %v898_v44 }
 0x36b   :  { %1338 = vmatmul.mubr.bf16.vlgmr.msra.gmra.mxu1 %v900_v46 }
 0x42b   :  { %v1001_v51 = vpop.f32.mrf.mxu1 }
 0x42c   :  { %v1002_v53 = vadd.f32 %v1001_v51, %v918_v50 }
 0x42d   :  { %v1339_v52 = vpop.f32.mrf.mxu1 }
 0x42e   :  { %v1008_v57 = vmax.f32 %v1002_v53, 0.0 }
 0x42f   :  { %v1004_v54 = vpop.f32.mrf.mxu1 }
 0x430   :  { %v1005_v55 = vadd.f32 %v1004_v54, %v918_v50 }
 0x431   :  { %v1340_v56 = vpop.f32.mrf.mxu1 }
 0x432   :  { %v1009_v58 = vmax.f32 %v1005_v55, 0.0 }
 0x434   :  { %v1010_v62 = vpack.c.bf16 %v1009_v58, %v1008_v57 }
 0x436   :  { %1358 = vmatmul.mubr.bf16.vlgmr.msra.gmra.mxu0 %v1010_v62 }
 0x4f6   :  { %v1111_v63 = vpop.f32.mrf.mxu0 }
 0x4f7   :  { %v1112_v2 = vadd.f32 %v1111_v63, %v1028_v10 }
 0x4f8   :  { %v1359_v0 = vpop.f32.mrf.mxu0 }
 0x4fa   :  { %v1114_v1 = vpop.f32.mrf.mxu0 }
 0x4fb   :  { %v1115_v3 = vadd.f32 %v1114_v1, %v1028_v10 }
 0x4fc   :  { %v1360_v4 = vpop.f32.mrf.mxu0 }
 0x4fd   :  { %v1239_v5 = vpack.c.bf16 %v1115_v3, %v1112_v2 }
 0x4ff   :  { %1240 = vst [vmem:[%s1707_s6] sm:$0xff] %v1239_v5  }
 0x500   :  { %1132 = vsyncpa [#allocation3], 1 }
 0x501   :  { %1133 = vsyncpa [#allocation5], 1 }

</bundles_post_ra>
